<compile_context>
chip_gen: v7x
topology: tpu7x:2x2x1
jax: 0.10.0
libtpu: 0.0.40
codegen_flags: <defaults>
</compile_context>

<pallas_src>
import functools

import jax
import jax.numpy as jnp
from jax.experimental import pallas as pl
from jax.experimental.pallas import tpu as pltpu


# ---------------------------------------------------------------------------
# Pallas kernel:  scores[r] = w2[r] . relu(W1[r]^T @ z[r]^T + b1[r]) + b2[r]
# (lane-dense output, one grid step = one relation x one edge tile)
# ---------------------------------------------------------------------------
def _edge_mlp_kernel(zt_ref, w1t_ref, b1_ref, w2_ref, b2_ref, o_ref):
    # zt_ref : [2H, tile_e]   gathered + concatenated endpoint features (T)
    # w1t_ref: [H, 2H]        first linear of this relation, transposed
    # b1_ref : [H, 1]
    # w2_ref : [H, 1]         second linear (H -> 1)
    # b2_ref : [R, 1]         per-relation scalars, whole table in SMEM
    # o_ref  : [1, tile_e]    lane-dense scores
    r = pl.program_id(0)
    h = jnp.dot(w1t_ref[...], zt_ref[...],
                preferred_element_type=jnp.float32)            # [H, tile_e] MXU
    h = jnp.maximum(h + b1_ref[...], 0.0)                      # bias + ReLU (VPU)
    # H -> 1 projection: VPU multiply + cross-sublane reduce -> (1, tile_e)
    scores = jnp.sum(h * w2_ref[...], axis=0, keepdims=True) + b2_ref[r, 0]
    o_ref[...] = scores.astype(o_ref.dtype)


@functools.partial(jax.jit, static_argnums=(9,))
def _edge_scores(z_srcs, z_dsts, rows, cols, idx,
                 w1t_all, b1_all, w2_all, b2_all, tile_e):
    """Score all relations in one pallas_call.

    z_srcs/z_dsts/rows/cols: tuples (one entry per relation in call order).
    idx: int32[R] mapping call order -> stored parameter row.
    """
    R = len(rows)
    H = z_srcs[0].shape[1]
    Es = [int(r.shape[0]) for r in rows]
    max_e = max(Es)
    # Lane-dense tiles: multiple of 128, no bigger than needed for tiny E.
    tile = min(int(tile_e), max(128, ((max_e + 127) // 128) * 128))
    Ep = ((max_e + tile - 1) // tile) * tile

    # Gather + concat + transpose (+ pad) fuse into a single XLA pass that
    # produces [R, 2H, Ep]; edges end up on the lane axis for the kernel.
    zts = []
    for i in range(R):
        zt = jnp.concatenate([z_srcs[i][rows[i]], z_dsts[i][cols[i]]],
                             axis=-1).T                              # [2H, E_i]
        if Ep != Es[i]:
            zt = jnp.pad(zt, ((0, 0), (0, Ep - Es[i])))
        zts.append(zt)
    zt_all = jnp.stack(zts, axis=0)                                  # [R, 2H, Ep]

    # Select per-call relation parameters (tiny gathers, fused by XLA).
    w1t = w1t_all[idx]                                               # [R, H, 2H]
    b1 = b1_all[idx]                                                 # [R, H, 1]
    w2 = w2_all[idx]                                                 # [R, H, 1]
    b2 = b2_all[idx]                                                 # [R, 1]

    out = pl.pallas_call(
        _edge_mlp_kernel,
        out_shape=jax.ShapeDtypeStruct((R, 1, Ep), jnp.float32),
        grid=(R, Ep // tile),
        in_specs=[
            pl.BlockSpec((None, 2 * H, tile), lambda r, i: (r, 0, i)),  # features
            pl.BlockSpec((None, H, 2 * H), lambda r, i: (r, 0, 0)),     # W1^T
            pl.BlockSpec((None, H, 1), lambda r, i: (r, 0, 0)),         # b1
            pl.BlockSpec((None, H, 1), lambda r, i: (r, 0, 0)),         # w2
            pl.BlockSpec(memory_space=pltpu.MemorySpace.SMEM),          # b2 table
        ],
        out_specs=pl.BlockSpec((None, 1, tile), lambda r, i: (r, 0, i)),
        compiler_params=pltpu.CompilerParams(
            dimension_semantics=("parallel", "parallel")),
    )(zt_all, w1t, b1, w2, b2)

    return tuple(out[i, 0, :Es[i]][:, None] for i in range(R))          # [E_i, 1]


# ---------------------------------------------------------------------------
# EdgeDecoder module (JAX/Pallas)
# ---------------------------------------------------------------------------
class EdgeDecoderPallas:
    def __init__(self, hidden_channels, relations, key, tile_e=1024):
        self.hidden_channels = hidden_channels
        self.relations = relations
        self.tile_e = int(tile_e)
        H = hidden_channels
        self.rel2idx = {rel[0] + "_" + rel[2]: i for i, rel in enumerate(relations)}

        w1t_list, b1_list, w2_list, b2_list = [], [], [], []
        for _ in relations:
            key, k1, k2, k3, k4 = jax.random.split(key, 5)
            # Linear(2H -> H): math layout x @ W1 + b1, W1: [2H, H]
            bound1 = 1.0 / jnp.sqrt(2.0 * H)
            w1 = jax.random.uniform(k1, (2 * H, H), jnp.float32, -bound1, bound1)
            b1 = jax.random.uniform(k2, (H, 1), jnp.float32, -bound1, bound1)
            # Linear(H -> 1): W2: [H, 1]
            bound2 = 1.0 / jnp.sqrt(float(H))
            w2 = jax.random.uniform(k3, (H, 1), jnp.float32, -bound2, bound2)
            b2 = jax.random.uniform(k4, (1,), jnp.float32, -bound2, bound2)
            # store W1 transposed: kernel computes h^T = W1^T @ z^T
            w1t_list.append(w1.T)
            b1_list.append(b1)
            w2_list.append(w2)
            b2_list.append(b2)

        # Stacked parameter tables (relation axis leading).
        self.w1t_all = jnp.stack(w1t_list)               # [R, H, 2H]
        self.b1_all = jnp.stack(b1_list)                 # [R, H, 1]
        self.w2_all = jnp.stack(w2_list)                 # [R, H, 1]
        self.b2_all = jnp.stack(b2_list)                 # [R, 1]

    def __call__(self, z_dict, edge_label_index_dict):
        keys = list(edge_label_index_dict.keys())
        idx = jnp.array([self.rel2idx[k[0] + "_" + k[2]] for k in keys],
                        dtype=jnp.int32)
        z_srcs = tuple(z_dict[k[0]] for k in keys)
        z_dsts = tuple(z_dict[k[2]] for k in keys)
        rows = tuple(edge_label_index_dict[k][0] for k in keys)
        cols = tuple(edge_label_index_dict[k][1] for k in keys)
        outs = _edge_scores(z_srcs, z_dsts, rows, cols, idx,
                            self.w1t_all, self.b1_all, self.w2_all,
                            self.b2_all, self.tile_e)
        return {k: outs[i] for i, k in enumerate(keys)}

    # pure-JAX reference for correctness check
    def reference(self, z_dict, edge_label_index_dict):
        out = {}
        for key, edge_label_index in edge_label_index_dict.items():
            i = self.rel2idx[key[0] + "_" + key[2]]
            row, col = edge_label_index[0], edge_label_index[1]
            z = jnp.concatenate(
                [z_dict[key[0]][row], z_dict[key[2]][col]], axis=-1)   # [E, 2H]
            h = jnp.maximum(z @ self.w1t_all[i].T + self.b1_all[i].T, 0.0)
            out[key] = h @ self.w2_all[i] + self.b2_all[i]             # [E, 1]
        return out


if __name__ == "__main__":
    hidden = 32
    relations = [
        ("user", "rates", "movie"),
        ("user", "belongs_to", "group"),
    ]
    n_nodes = {"user": 10, "movie": 12, "group": 6}
    num_edges = 8

    key = jax.random.PRNGKey(0)
    key, kmod = jax.random.split(key)
    model = EdgeDecoderPallas(hidden, relations, kmod)

    # node embeddings per node type
    z_dict = {}
    for ntype, n in n_nodes.items():
        key, kz = jax.random.split(key)
        z_dict[ntype] = jax.random.normal(kz, (n, hidden), jnp.float32)

    # edge_label_index per relation: [2, E] int32
    edge_label_index_dict = {}
    for rel in relations:
        key, kr, kc = jax.random.split(key, 3)
        row = jax.random.randint(kr, (num_edges,), 0, n_nodes[rel[0]])
        col = jax.random.randint(kc, (num_edges,), 0, n_nodes[rel[2]])
        edge_label_index_dict[rel] = jnp.stack([row, col], axis=0)

    out = model(z_dict, edge_label_index_dict)
    out = jax.tree_util.tree_map(jax.block_until_ready, out)

    ref = model.reference(z_dict, edge_label_index_dict)
    for rel in relations:
        assert out[rel].shape == (num_edges, 1), out[rel].shape
        assert jnp.allclose(out[rel], ref[rel], atol=1e-4, rtol=1e-4), rel

    print("KERNEL_OK")
</pallas_src>

<mosaic_0001>
module attributes {stable_mosaic.version = 11 : i64} {
  func.func @_edge_mlp_kernel(%arg0: i32, %arg1: i32, %arg2: memref<1x64x128xf32, #tpu.memory_space<vmem>>, %arg3: memref<1x32x64xf32, #tpu.memory_space<vmem>>, %arg4: memref<1x32x1xf32, #tpu.memory_space<vmem>>, %arg5: memref<1x32x1xf32, #tpu.memory_space<vmem>>, %arg6: memref<2x1xf32, #tpu.memory_space<smem>>, %arg7: memref<1x1x128xf32, #tpu.memory_space<vmem>>) attributes {dimension_semantics = [#tpu.dimension_semantics<parallel>, #tpu.dimension_semantics<parallel>], iteration_bounds = array<i64: 2, 1>, scalar_prefetch = 0 : i64, scratch_operands = 0 : i64, tpu.core_type = #tpu.core_type<tc>, window_params = [{transform_indices = @transform_0, window_bounds = array<i64: 1, 64, 128>}, {transform_indices = @transform_1, window_bounds = array<i64: 1, 32, 64>}, {transform_indices = @transform_2, window_bounds = array<i64: 1, 32, 1>}, {transform_indices = @transform_3, window_bounds = array<i64: 1, 32, 1>}, {transform_indices = @transform_4, window_bounds = array<i64: 2, 1>}, {transform_indices = @transform_5, window_bounds = array<i64: 1, 1, 128>}]} {
    %c0 = arith.constant 0 : index
    %c0_0 = arith.constant 0 : index
    %c0_1 = arith.constant 0 : index
    %0 = vector.load %arg3[%c0, %c0_0, %c0_1] : memref<1x32x64xf32, #tpu.memory_space<vmem>>, vector<1x32x64xf32>
    %1 = vector.shape_cast %0 : vector<1x32x64xf32> to vector<32x64xf32>
    %c0_2 = arith.constant 0 : index
    %c0_3 = arith.constant 0 : index
    %c0_4 = arith.constant 0 : index
    %2 = vector.load %arg2[%c0_2, %c0_3, %c0_4] : memref<1x64x128xf32, #tpu.memory_space<vmem>>, vector<1x64x128xf32>
    %3 = vector.shape_cast %2 : vector<1x64x128xf32> to vector<64x128xf32>
    %cst = arith.constant dense<0.000000e+00> : vector<32x128xf32>
    %4 = tpu.matmul %1, %3, %cst {dimension_numbers = #tpu.dot_dimension_numbers<[1], [0], [0], [1], [0, 0, 1, 1], [], []>} : vector<32x64xf32>, vector<64x128xf32>, vector<32x128xf32> -> vector<32x128xf32>
    %c0_5 = arith.constant 0 : index
    %c0_6 = arith.constant 0 : index
    %c0_7 = arith.constant 0 : index
    %5 = vector.load %arg4[%c0_5, %c0_6, %c0_7] : memref<1x32x1xf32, #tpu.memory_space<vmem>>, vector<1x32x1xf32>
    %6 = vector.shape_cast %5 : vector<1x32x1xf32> to vector<32x1xf32>
    %7 = vector.broadcast %6 : vector<32x1xf32> to vector<32x128xf32>
    %8 = arith.addf %4, %7 : vector<32x128xf32>
    %cst_8 = arith.constant 0.000000e+00 : f32
    %9 = vector.broadcast %cst_8 : f32 to vector<32x128xf32>
    %10 = arith.maximumf %8, %9 : vector<32x128xf32>
    %c0_9 = arith.constant 0 : index
    %c0_10 = arith.constant 0 : index
    %c0_11 = arith.constant 0 : index
    %11 = vector.load %arg5[%c0_9, %c0_10, %c0_11] : memref<1x32x1xf32, #tpu.memory_space<vmem>>, vector<1x32x1xf32>
    %12 = vector.shape_cast %11 : vector<1x32x1xf32> to vector<32x1xf32>
    %13 = vector.broadcast %12 : vector<32x1xf32> to vector<32x128xf32>
    %14 = arith.mulf %10, %13 : vector<32x128xf32>
    %cst_12 = arith.constant dense<0.000000e+00> : vector<128xf32>
    %15 = vector.multi_reduction <add>, %14, %cst_12 [0] : vector<32x128xf32> to vector<128xf32>
    %16 = vector.shape_cast %15 : vector<128xf32> to vector<1x128xf32>
    %17 = arith.index_cast %arg0 : i32 to index
    %c0_13 = arith.constant 0 : index
    %18 = memref.load %arg6[%17, %c0_13] : memref<2x1xf32, #tpu.memory_space<smem>>
    %19 = vector.broadcast %18 : f32 to vector<1x128xf32>
    %20 = arith.addf %16, %19 : vector<1x128xf32>
    %c0_14 = arith.constant 0 : index
    %c0_15 = arith.constant 0 : index
    %c0_16 = arith.constant 0 : index
    %21 = vector.load %arg7[%c0_14, %c0_15, %c0_16] : memref<1x1x128xf32, #tpu.memory_space<vmem>>, vector<1x1x128xf32>
    %22 = vector.shape_cast %21 : vector<1x1x128xf32> to vector<1x128xf32>
    %23 = vector.shape_cast %20 : vector<1x128xf32> to vector<1x1x128xf32>
    tpu.vector_store %arg7[%c0_14, %c0_15, %c0_16], %23 {strides = array<i32>} : memref<1x1x128xf32, #tpu.memory_space<vmem>>, vector<1x1x128xf32>,
    return
  }
  func.func @transform_0(%arg0: i32, %arg1: i32) -> (i32, i32, i32) {
    %c0_i32 = arith.constant 0 : i32
    %c0_i32_0 = arith.constant 0 : i32
    return %arg0, %c0_i32, %arg1 : i32, i32, i32
  }
  func.func @transform_1(%arg0: i32, %arg1: i32) -> (i32, i32, i32) {
    %c0_i32 = arith.constant 0 : i32
    %c0_i32_0 = arith.constant 0 : i32
    %c0_i32_1 = arith.constant 0 : i32
    return %arg0, %c0_i32, %c0_i32_0 : i32, i32, i32
  }
  func.func @transform_2(%arg0: i32, %arg1: i32) -> (i32, i32, i32) {
    %c0_i32 = arith.constant 0 : i32
    %c0_i32_0 = arith.constant 0 : i32
    %c0_i32_1 = arith.constant 0 : i32
    return %arg0, %c0_i32, %c0_i32_0 : i32, i32, i32
  }
  func.func @transform_3(%arg0: i32, %arg1: i32) -> (i32, i32, i32) {
    %c0_i32 = arith.constant 0 : i32
    %c0_i32_0 = arith.constant 0 : i32
    %c0_i32_1 = arith.constant 0 : i32
    return %arg0, %c0_i32, %c0_i32_0 : i32, i32, i32
  }
  func.func @transform_4(%arg0: i32, %arg1: i32) -> (i32, i32) {
    %c0_i32 = arith.constant 0 : i32
    %c0_i32_0 = arith.constant 0 : i32
    %c0_i32_1 = arith.constant 0 : i32
    return %c0_i32, %c0_i32_0 : i32, i32
  }
  func.func @transform_5(%arg0: i32, %arg1: i32) -> (i32, i32, i32) {
    %c0_i32 = arith.constant 0 : i32
    %c0_i32_0 = arith.constant 0 : i32
    return %arg0, %c0_i32, %arg1 : i32, i32, i32
  }
}

</mosaic_0001>

<bundles_post_ra>
// kernel: _edge_scores.1
= control target key start
LH: loop header
LB: loop body
LE: loop exit
PB: predicated region body
PF: predicated region fallthrough
CT: control target
= control target key end

     0   :  { %10 = vsyncpa [#allocation3], 0  ;;  %s823_s18 = smov 0   ;;  %s825_s19 = smov 0   ;;  %s912_s0 = inlined_call_operand.vmem [shape: f32[2,64,128], index: 0, kind: input, shape index: {}]   ;;  %s913_s1 = inlined_call_operand.vmem [shape: f32[2,32,64], index: 1, kind: input, shape index: {}]   ;;  %s914_s2 = inlined_call_operand.vmem [shape: f32[2,32,1], index: 2, kind: input, shape index: {}]   ;;  %s915_s3 = inlined_call_operand.vmem [shape: f32[2,32,1], index: 3, kind: input, shape index: {}]   ;;  %s916_s4 = inlined_call_operand.vmem [shape: f32[2,1], index: 4, kind: input, shape index: {}]   ;;  %s917_s5 = inlined_call_operand.vmem [shape: f32[2,1,128], index: 5, kind: output, shape index: {}]  }
   0x1   :  { %s827_s20 = smov 0  }
   0x2 LB: > { %s626_s21 = sadd.s32 4294967295, %s789_s20   ;;  %s28_s22 = sadd.s32 1, %s785_s19  ;;  %s789_s20 = sphi %s827_s20, %s16_s20   ;;  %s785_s19 = sphi %s825_s19, %s921_s19   ;;  %s781_s18 = sphi %s823_s18, %s920_s18  }
   0x3   : > { %p30_p0 = scmp.ge.s32.totalorder %s28_s22, 2  ;;  %p628_p1 = scmp.ge.s32.totalorder %s789_s20, 1 }
   0x4   : > { %p188_p2 = scmp.lt.s32.totalorder %s789_s20, 3  ;;  %p848_p4 = scmp.eq.s32.totalorder %s626_s21, 0 }
   0x5   : > { %s923_s22 = smov (%p30_p0, %s28_s22), 0  ;;  %s201_s27 = sshll.u32 %s916_s4, 4  ;;  %s202_s27 = int_to_ptr.vmem [resolvable:$true] %s201_s27 }
   0x6   : > { %p844_p3 = pnand %p628_p1, %p188_p2  ;;  %s748_s28 = scalar_lea.vmem %s202_s27, 32 }
   0x7   : > { %p749_p7 = scmp.ne.s32.totalorder %s202_s27, %s748_s28  ;;  %p756_p11 = scmp.lt.s32.totalorder %s202_s27, %s202_s27 }
   0x8   : > { %p714_p5 = pneg %p844_p3  ;;  %p757_p12 = scmp.lt.s32.totalorder %s748_s28, %s748_s28 }
   0xa   : > { %p715_p6 = pnand %p848_p4, %p714_p5  ;;  %p758_p13 = por %p757_p12, %p756_p11 }
   0xc   : > { %p750_p8 = pneg %p715_p6 }
   0xe   : > { %p751_p9 = pnand %p750_p8, %p749_p7 }
  0x10   : > { %p752_p10 = pneg %p751_p9 }
  0x12   : > { %p759_p0 = pnand %p758_p13, %p752_p10 }
  0x14   : > { %762 = shalt.err (!%p759_p0)
}
  0x15   : > { %s791_s29 = smov [#allocation2]   ;;  %249 = sbr.rel (%p844_p3) target bundleno = 296 (0x128), region = 40 }
  0x16   : > { %717 = dma.vmem_to_smem (!%p715_p6), %s202_s27, 32, %s791_s29, [#allocation3]  }
  0x1c   : > { %776 = dma.done.wait (%p848_p4), [#allocation3], 32  }
  0x1d   : > { %778 = vsyncadd (%p848_p4), [#allocation3], 4294967264 }
  0x1e   : > { %255 = sfence }
  0x1f   : > { %p297_p1 = scmp.lt.s32.totalorder %s781_s18, 1  ;;  %v792_v0 = vmov 0   ;;  %vm362_vm0 = vcmask 523264   ;;  %s645_s24 = sshll.u32 %s781_s18, 7 }
  0x20   : > { %746 = vset.pattern.permute.xlu0 %v792_v0  ;;  %747 = vset.pattern.permute.xlu1 %v792_v0  ;;  %s502_s25 = sld [smem:[#allocation2 + %s645_s24]] }
  0x21   : > { %s867_s30 = scalar_select %p297_p1, %s781_s18, 1 }
  0x23   : > { %s648_s6 = sshll.u32 %s867_s30, 6  ;;  %s871_s7 = sshll.u32 %s867_s30, 5 }
  0x24   : > { %s304_s10 = scalar_lea.vmem %s912_s0, %s648_s6  ;;  %s880_s13 = scalar_lea.vmem %s913_s1, %s871_s7 }
  0x25   : > { %v330_v1 = vld [vmem:[%s304_s10] sm:$0xff]  ;;  %v331_v2 = vld [vmem:[%s304_s10 + $0x8] sm:$0xff]  ;;  %v332_v3 = vld [vmem:[%s304_s10 + $0x10] sm:$0xff]  ;;  %s314_s16 = scalar_lea.vmem %s914_s2, %s871_s7  ;;  %s319_s23 = scalar_lea.vmem %s915_s3, %s871_s7 }
  0x26   : > { %v686_v4 = vpack.c.bf16 %v331_v2, %v330_v1  ;;  %v333_v5 = vld [vmem:[%s304_s10 + $0x18] sm:$0xff]  ;;  %v334_v7 = vld [vmem:[%s304_s10 + $0x20] sm:$0xff]  ;;  %v335_v8 = vld [vmem:[%s304_s10 + $0x28] sm:$0xff]  ;;  %v503_v57 = vstv %s502_s25  ;;  %s325_s28 = scalar_lea.vmem %s917_s5, %s867_s30 }
  0x27   : > { %v690_v6 = vpack.c.bf16 %v333_v5, %v332_v3  ;;  %v326_v9 = vld [vmem:[%s880_s13] sm:$0xff]  ;;  %v328_v10 = vld [vmem:[%s880_s13 + $0x10] sm:$0xff]  ;;  %v694_v13 = vpack.c.bf16 %v335_v8, %v334_v7  ;;  %v337_v15 = vld [vmem:[%s304_s10 + $0x38] sm:$0xff] }
  0x28   : > { %687 = vmatprep.subr.bf16.mxu0 %v686_v4  ;;  %702 = vmatprep.subr.bf16.mxu1 %v686_v4  ;;  %v338_v11 = vld [vmem:[%s314_s16] sm:$0xff]  ;;  %v340_v12 = vld [vmem:[%s314_s16 + $0x10] sm:$0xff]  ;;  %v339_v16 = vld [vmem:[%s314_s16 + $0x8] sm:$0xff] }
  0x29   : > { %689 = vmatpush3.bf16.msra.mxu0 %v686_v4  ;;  %706 = vmatpush3.bf16.msra.mxu1 %v686_v4  ;;  %v336_v14 = vld [vmem:[%s304_s10 + $0x30] sm:$0xff]  ;;  %v341_v17 = vld [vmem:[%s314_s16 + $0x18] sm:$0xff]  ;;  %v464_v19 = vld [vmem:[%s319_s23] sm:$0xff] }
  0x2a   : > { %691 = vmatprep.subr.bf16.mxu0 %v690_v6  ;;  %703 = vmatprep.subr.bf16.mxu1 %v690_v6  ;;  %v698_v18 = vpack.c.bf16 %v337_v15, %v336_v14  ;;  %v465_v20 = vld [vmem:[%s319_s23 + $0x8] sm:$0xff]  ;;  %v329_v22 = vld [vmem:[%s880_s13 + $0x18] sm:$0xff]  ;;  %v466_v23 = vld [vmem:[%s319_s23 + $0x10] sm:$0xff] }
  0x2b   : > { %680 = vmatprep.mubr.msk.f32.mxu0 %vm362_vm0, %v326_v9  ;;  %683 = vmatprep.mubr.msk.f32.mxu1 %vm362_vm0, %v328_v10  ;;  %v327_v21 = vld [vmem:[%s880_s13 + $0x8] sm:$0xff]  ;;  %v467_v24 = vld [vmem:[%s319_s23 + $0x18] sm:$0xff] }
  0x2c   : > { %344 = vperm.xlu0 %746, %v338_v11   ;;  %354 = vperm.xlu1 %747, %v340_v12  }
  0x2d   : > { %693 = vmatpush3.bf16.msra.mxu0 %v690_v6  ;;  %707 = vmatpush3.bf16.msra.mxu1 %v690_v6 }
  0x2e   : > { %695 = vmatprep.subr.bf16.mxu0 %v694_v13  ;;  %704 = vmatprep.subr.bf16.mxu1 %v694_v13 }
  0x30   : > { %349 = vperm.xlu0 %746, %v339_v16   ;;  %359 = vperm.xlu1 %747, %v341_v17  }
  0x31   : > { %697 = vmatpush3.bf16.msra.mxu0 %v694_v13  ;;  %708 = vmatpush3.bf16.msra.mxu1 %v694_v13 }
  0x32   : > { %699 = vmatprep.subr.bf16.mxu0 %v698_v18  ;;  %705 = vmatprep.subr.bf16.mxu1 %v698_v18 }
  0x34   : > { %470 = vperm.xlu0 %746, %v464_v19   ;;  %475 = vperm.xlu1 %747, %v465_v20  }
  0x35   : > { %701 = vmatpush3.bf16.msra.mxu0 %v698_v18  ;;  %709 = vmatpush3.bf16.msra.mxu1 %v698_v18 }
  0x38   : > { %681 = vmatmul.mubr.msk.f32.vlgmr.msra.gmra.mrb[0].mxu0 %vm362_vm0, %v327_v21  ;;  %684 = vmatmul.mubr.msk.f32.vlgmr.msra.gmra.mrb[0].mxu1 %vm362_vm0, %v329_v22 }
  0x39   : > { %480 = vperm.xlu0 %746, %v466_v23   ;;  %485 = vperm.xlu1 %747, %v467_v24  }
  0xab   : > { %v345_v25 = vpop.permute.xlu0 %344  ;;  %v355_v26 = vpop.permute.xlu1 %354 }
  0xaf   : > { %v350_v27 = vpop.permute.xlu0 %349  ;;  %v360_v28 = vpop.permute.xlu1 %359 }
  0xb3   : > { %v471_v29 = vpop.permute.xlu0 %470  ;;  %v476_v38 = vpop.permute.xlu1 %475 }
  0xb8   : > { %v481_v45 = vpop.permute.xlu0 %480  ;;  %v486_v48 = vpop.permute.xlu1 %485 }
 0x10b   : > { %v682_v30 = vpop.f32.mrb[0].mxu0  ;;  %v685_v31 = vpop.f32.mrb[0].mxu1 }
 0x10c   : > { %v447_v32 = vadd.f32 %v682_v30, %v350_v27  ;;  %v441_v33 = vpop.f32.mrb[1].mxu0  ;;  %v451_v34 = vpop.f32.mrb[1].mxu1  ;;  %v457_v35 = vadd.f32 %v685_v31, %v360_v28 }
 0x10d   : > { %v442_v36 = vadd.f32 %v441_v33, %v345_v25  ;;  %v452_v37 = vadd.f32 %v451_v34, %v355_v26 }
 0x10e   : > { %v461_v39 = vmax.f32 %v447_v32, 0.0  ;;  %v463_v43 = vmax.f32 %v457_v35, 0.0 }
 0x10f   : > { %v460_v40 = vmax.f32 %v442_v36, 0.0  ;;  %v462_v41 = vmax.f32 %v452_v37, 0.0 }
 0x110   : > { %v489_v42 = vmul.f32 %v476_v38, %v461_v39  ;;  %v491_v49 = vmul.f32 %v486_v48, %v463_v43 }
 0x111   : > { %v488_v44 = vmul.f32 %v471_v29, %v460_v40  ;;  %v490_v47 = vmul.f32 %v481_v45, %v462_v41 }
 0x113   : > { %v492_v46 = vadd.f32 %v489_v42, %v488_v44 }
 0x115   : > { %v493_v50 = vadd.f32 %v492_v46, %v490_v47 }
 0x117   : > { %v494_v51 = vadd.f32 %v493_v50, %v491_v49 }
 0x119   : > { %v495_v52 = vrot.slane %v494_v51, 4 }
 0x11b   : > { %v496_v53 = vadd.f32 %v495_v52, %v494_v51 }
 0x11d   : > { %v497_v54 = vrot.slane %v496_v53, 2 }
 0x11f   : > { %v498_v55 = vadd.f32 %v497_v54, %v496_v53 }
 0x121   : > { %v499_v56 = vrot.slane %v498_v55, 1 }
 0x123   : > { %v500_v58 = vadd.f32 %v499_v56, %v498_v55 }
 0x125   : > { %v504_v59 = vadd.f32 %v503_v57, %v500_v58 }
 0x127   : > { %505 = vst [vmem:[%s325_s28] sm:$0x1] %v504_v59 }
 0x128 PF: > { %s16_s20 = sadd.s32 1, %s789_s20   ;;  %s920_s18 = smov %s785_s19 }
 0x129   : > { %p13_p2 = scmp.ge.s32.totalorder %s16_s20, 4   ;;  %s921_s19 = smov %s923_s22 }
 0x12b   :  { %15 = sbr.rel (!%p13_p2) target bundleno = 2 (0x2), region = 84 }
 0x132   :  { %529 = vsyncpa [#allocation3], 1 }
 0x133   :  { %531 = vsyncpa [#allocation3 + $0x1], 1 }

</bundles_post_ra>
